<compile_context>
chip_gen: v7x
topology: tpu7x:2x2x1
jax: 0.10.0
libtpu: 0.0.40
codegen_flags: <defaults>
</compile_context>

<pallas_src>
import functools

import numpy as np
import jax
import jax.numpy as jnp
from jax.experimental import pallas as pl
from jax.experimental.pallas import tpu as pltpu


def _pick_block(full, max_block, step):
    """Largest multiple of `step` <= max_block that divides `full`, else `full`."""
    if full <= max_block:
        return full
    b = (max_block // step) * step
    while b >= step:
        if full % b == 0:
            return b
        b -= step
    return full


@functools.lru_cache(maxsize=None)
def _vmem_budget():
    """(x-block byte budget, scoped vmem limit), gated on the TPU generation.

    v5e/v6e have 128 MiB physical VMEM -> a larger tile/limit is free.
    v7x has only 64 MiB -> keep the double-buffered footprint under ~32 MiB.
    """
    try:
        cap = int(pltpu.get_tpu_info().vmem_capacity_bytes)
    except Exception:            # conservative fallback
        cap = 64 << 20
    if cap >= (100 << 20):       # v5e / v6e (128 MiB VMEM)
        return 16 << 20, 64 << 20
    return 8 << 20, 32 << 20     # v7x (64 MiB VMEM)


# ----------------------------- Kernel 1: 1x1 conv ---------------------------
# out[n, hw] = sum_c w[c] * x[n, c, hw] + b.   AI ~0.5 flop/byte => HBM bound;
# compute is n_blk small (1, c_blk) @ (c_blk, hw_blk) MXU matmuls per step.

def _conv1x1_kernel(b_ref, w_ref, x_ref, o_ref, acc_ref):
    c = pl.program_id(2)
    n_blk = x_ref.shape[0]

    @pl.when(c == 0)
    def _():
        acc_ref[...] = jnp.zeros_like(acc_ref)

    w = w_ref[pl.ds(c, 1), :]                          # (1, c_blk) resident weights
    parts = [jnp.dot(w, x_ref[i], preferred_element_type=jnp.float32)
             for i in range(n_blk)]                    # n_blk MXU matmuls
    contrib = parts[0] if n_blk == 1 else jnp.concatenate(parts, axis=0)
    acc_ref[...] += contrib                            # dense (n_blk, hw_blk) RMW

    @pl.when(c == pl.num_programs(2) - 1)
    def _():
        o_ref[...] = acc_ref[...] + b_ref[0]           # sublane-dense final store


def conv1x1_flat(x2d, w_row, b):
    """x2d: (N, C, HW) f32, w_row: (1, C), b: (1,)  ->  (N, HW) f32."""
    N, C, HW = x2d.shape
    x_budget, vmem_limit = _vmem_budget()
    hw_blk = _pick_block(HW, 4096, 128)
    c_blk = _pick_block(C, 512, 128)
    max_nb = int(max(1, min(8, x_budget // (4 * c_blk * hw_blk))))
    n_blk = _pick_block(N, max_nb, 1)
    nc = C // c_blk
    w2 = w_row.reshape(nc, c_blk)                      # row c = channel block c

    return pl.pallas_call(
        _conv1x1_kernel,
        out_shape=jax.ShapeDtypeStruct((N, HW), jnp.float32),
        grid=(N // n_blk, HW // hw_blk, nc),
        in_specs=[
            pl.BlockSpec(memory_space=pltpu.MemorySpace.SMEM),    # bias (1,)
            pl.BlockSpec(memory_space=pltpu.MemorySpace.VMEM),    # weights, resident
            pl.BlockSpec((n_blk, c_blk, hw_blk), lambda n, h, c: (n, c, h)),
        ],
        out_specs=pl.BlockSpec((n_blk, hw_blk), lambda n, h, c: (n, h)),
        scratch_shapes=[pltpu.VMEM((n_blk, hw_blk), jnp.float32)],
        compiler_params=pltpu.CompilerParams(
            dimension_semantics=("parallel", "parallel", "arbitrary"),
            vmem_limit_bytes=vmem_limit),
    )(b, w2, x2d)


# --------------------- Kernel 2: ConvTranspose2d + Crop ----------------------
# out[n] = sum_j L_j @ s[n] @ R_j ; stride zero-insertion, padding, kernel taps
# and the crop are folded into the constant matrices L (K,Hc,H) / Rflat (W,K*Wc).

def _tconv_crop_kernel(s_ref, r_ref, l_ref, o_ref, *, n_imgs, H, K, Wc):
    # Stage 1: ONE MXU matmul covers all K column taps and all N images.
    u = jnp.dot(s_ref[...], r_ref[...],
                preferred_element_type=jnp.float32)    # (N*H, K*Wc)
    hc_blk = o_ref.shape[1]
    # Stage 2: row-side taps, tiled over cropped output rows (hc_blk per step).
    for n in range(n_imgs):
        u_n = u[n * H:(n + 1) * H, :]                  # (H, K*Wc)
        acc = jnp.zeros((hc_blk, Wc), jnp.float32)
        for j in range(K):
            acc = acc + jnp.dot(l_ref[j], u_n[:, j * Wc:(j + 1) * Wc],
                                preferred_element_type=jnp.float32)
        o_ref[n] = acc


def tconv_crop(s_tall, L, r_flat, *, n_imgs, H, K, Wc):
    """s_tall: (N*H, W); L: (K, Hc, H); r_flat: (W, K*Wc)  ->  (N, Hc, Wc)."""
    NH, W = s_tall.shape
    _, Hc, _ = L.shape
    _, vmem_limit = _vmem_budget()
    # Cap the live (hc_blk, Wc) accumulator at ~128 KiB so it stays in vregs.
    hc_cap = min(256, max(8, ((128 * 1024) // (4 * Wc)) // 8 * 8))
    hc_blk = _pick_block(Hc, hc_cap, 8)
    kernel = functools.partial(_tconv_crop_kernel, n_imgs=n_imgs, H=H, K=K, Wc=Wc)
    return pl.pallas_call(
        kernel,
        out_shape=jax.ShapeDtypeStruct((n_imgs, Hc, Wc), jnp.float32),
        grid=(Hc // hc_blk,),
        in_specs=[
            pl.BlockSpec((NH, W), lambda hb: (0, 0)),             # side maps (all n)
            pl.BlockSpec((W, K * Wc), lambda hb: (0, 0)),         # Rflat constants
            pl.BlockSpec((K, hc_blk, H), lambda hb: (0, hb, 0)),  # L, tiled on Hc
        ],
        out_specs=pl.BlockSpec((n_imgs, hc_blk, Wc), lambda hb: (0, hb, 0)),
        compiler_params=pltpu.CompilerParams(
            dimension_semantics=("parallel",),
            vmem_limit_bytes=vmem_limit),
    )(s_tall, r_flat, L)


# ----------------------------- Module wrapper -------------------------------

class SideOutputCropPallas:
    """JAX/Pallas re-implementation of SideOutputCrop (forward only)."""

    def __init__(self, num_output, kernel_sz=None, stride=None, upconv_pad=0,
                 do_crops=True, key=None):
        self.num_output = num_output
        self.kernel_sz = kernel_sz
        self.stride = stride
        self.upconv_pad = upconv_pad
        self._do_crops = do_crops
        self.upsample = kernel_sz is not None

        if key is None:
            key = jax.random.PRNGKey(0)
        k_w, k_b, k_t = jax.random.split(key, 3)

        # Conv2d(num_output, 1, kernel_size=1, bias=True): weight (1,C,1,1) -> (1,C).
        bound = 1.0 / np.sqrt(num_output)
        self.conv_w = jax.random.uniform(k_w, (1, num_output), jnp.float32, -bound, bound)
        self.conv_b = jax.random.uniform(k_b, (1,), jnp.float32, -bound, bound)

        if self.upsample:
            if upconv_pad > kernel_sz - 1:
                raise ValueError("upconv_pad must be <= kernel_sz - 1")
            tbound = 1.0 / np.sqrt(kernel_sz * kernel_sz)
            self.up_w = jax.random.uniform(
                k_t, (kernel_sz, kernel_sz), jnp.float32, -tbound, tbound)
            # Host-side copy of the spatially flipped kernel for constant folding.
            self._kflip_np = np.asarray(self.up_w)[::-1, ::-1].copy()
            self.crop_offset = (kernel_sz // 4) if do_crops else 0
            self._lr_cache = {}

    # -- constants: ConvTranspose2d(K,S,P) + Crop(off) == sum_j L_j @ s @ R_j --
    def _get_lr(self, H, W, Hc, Wc, off):
        cache_key = (H, W, Hc, Wc, off)
        hit = self._lr_cache.get(cache_key)
        if hit is not None:
            return hit
        K, S, P = self.kernel_sz, self.stride, self.upconv_pad
        pad = K - 1 - P
        Hp = (H - 1) * S + 1 + 2 * pad
        Wp = (W - 1) * S + 1 + 2 * pad
        # Zero-insert (stride) + pad, expressed as constant selection matrices.
        A = np.zeros((Hp, H), np.float32)
        A[pad + np.arange(H) * S, np.arange(H)] = 1.0
        B = np.zeros((W, Wp), np.float32)
        B[np.arange(W), pad + np.arange(W) * S] = 1.0
        a_shift = np.stack([A[off + i: off + i + Hc, :] for i in range(K)])   # (K,Hc,H)
        # L_j = sum_i kflip[i, j] * A[off+i : off+i+Hc, :]      (row-side taps)
        L = np.einsum("ij,iap->jap", self._kflip_np, a_shift).astype(np.float32)
        # Rflat = [R_0 | R_1 | ... | R_{K-1}]                   (column-side taps)
        r_flat = np.concatenate(
            [B[:, off + j: off + j + Wc] for j in range(K)], axis=1)          # (W,K*Wc)
        out = (jnp.asarray(L), jnp.asarray(r_flat))
        self._lr_cache[cache_key] = out
        return out

    def __call__(self, res, reference=None):
        N, C, H, W = res.shape
        assert C == self.num_output

        if self.upsample:
            K, S, P = self.kernel_sz, self.stride, self.upconv_pad
            Hout = (H - 1) * S - 2 * P + K
            Wout = (W - 1) * S - 2 * P + K
            if self._do_crops:
                if reference is None:
                    raise ValueError(
                        "do_crops=True requires a `reference` tensor for the crop size")
                Hc, Wc = int(reference.shape[2]), int(reference.shape[3])
                off = self.crop_offset
            else:
                Hc, Wc, off = Hout, Wout, 0
            # PyTorch's index_select would raise on an oversized crop; Pallas VMEM
            # reads are not bounds-checked, so guard BEFORE dispatching any work.
            if off + Hc > Hout or off + Wc > Wout:
                raise ValueError("crop window exceeds the transposed-conv output")

        # 1x1 conv on a lane-dense (C, H*W) view (free NCHW reshape).
        side_flat = conv1x1_flat(res.reshape(N, C, H * W), self.conv_w, self.conv_b)
        if not self.upsample:
            return side_flat.reshape(N, 1, H, W)

        L, r_flat = self._get_lr(H, W, Hc, Wc, off)
        # (N, H*W) -> (N*H, W) is a free row-major reshape; it feeds the single
        # first-stage matmul (all images, all K taps) of kernel 2.
        out = tconv_crop(side_flat.reshape(N * H, W), L, r_flat,
                         n_imgs=N, H=H, K=self.kernel_sz, Wc=Wc)
        return out.reshape(N, 1, Hc, Wc)


# --------------------------------- main --------------------------------------

if __name__ == "__main__":
    key = jax.random.PRNGKey(0)
    k_x, k_params = jax.random.split(key)

    N, C, H, W = 2, 4, 16, 16          # res features: (N, num_output, H, W)
    K, S, P = 4, 2, 0                  # kernel_sz=4, stride=2, upconv_pad=0
    RH, RW = 32, 32                    # reference spatial size (only shape used)

    x = jax.random.normal(k_x, (N, C, H, W), jnp.float32)
    reference = jnp.zeros((N, 3, RH, RW), jnp.float32)

    module = SideOutputCropPallas(num_output=C, kernel_sz=K, stride=S,
                                  upconv_pad=P, do_crops=True, key=k_params)

    out = module(x, reference)
    out = jax.block_until_ready(out)

    # ---- independent numpy reference (PyTorch semantics) ----
    xn = np.asarray(x)
    wn = np.asarray(module.conv_w)[0]                                  # (C,)
    bn = float(np.asarray(module.conv_b)[0])
    conv_out = np.einsum("nchw,c->nhw", xn, wn)[:, None, :, :] + bn    # 1x1 conv

    wt = np.asarray(module.up_w)
    Hout, Wout = (H - 1) * S - 2 * P + K, (W - 1) * S - 2 * P + K
    tout = np.zeros((N, 1, Hout, Wout), np.float32)
    for p in range(H):                                                 # scatter form of
        for q in range(W):                                             # ConvTranspose2d
            tout[:, 0, p * S:p * S + K, q * S:q * S + K] += (
                conv_out[:, 0, p, q][:, None, None] * wt)
    off = K // 4
    ref_out = tout[:, :, off:off + RH, off:off + RW]                   # Crop(axis=2, off)

    assert out.shape == (N, 1, RH, RW), out.shape
    np.testing.assert_allclose(np.asarray(out), ref_out, rtol=1e-4, atol=1e-4)
    print("KERNEL_OK")
</pallas_src>

<mosaic_0001>
module attributes {stable_mosaic.version = 11 : i64} {
  func.func @_conv1x1_kernel(%arg0: i32, %arg1: i32, %arg2: i32, %arg3: memref<1xf32, #tpu.memory_space<smem>>, %arg4: memref<1x4xf32, #tpu.memory_space<vmem>>, %arg5: memref<2x4x256xf32, #tpu.memory_space<vmem>>, %arg6: memref<2x256xf32, #tpu.memory_space<vmem>>, %arg7: memref<2x256xf32, #tpu.memory_space<vmem>>) attributes {dimension_semantics = [#tpu.dimension_semantics<parallel>, #tpu.dimension_semantics<parallel>, #tpu.dimension_semantics<arbitrary>], iteration_bounds = array<i64: 1, 1, 1>, scalar_prefetch = 0 : i64, scratch_operands = 1 : i64, tpu.core_type = #tpu.core_type<tc>, window_params = [{transform_indices = @transform_0, window_bounds = array<i64: 1>}, {pipeline_mode = #tpu.pipeline_mode<synchronous>, transform_indices = @transform_1, window_bounds = array<i64: 1, 4>}, {transform_indices = @transform_2, window_bounds = array<i64: 2, 4, 256>}, {transform_indices = @transform_3, window_bounds = array<i64: 2, 256>}]} {
    %c0_i32 = arith.constant 0 : i32
    %0 = arith.cmpi eq, %arg2, %c0_i32 : i32
    %1 = arith.extui %0 : i1 to i32
    %c0_i32_0 = arith.constant 0 : i32
    %2 = arith.cmpi ne, %1, %c0_i32_0 : i32
    scf.if %2 {
      %cst_13 = arith.constant 0.000000e+00 : f32
      %18 = vector.broadcast %cst_13 : f32 to vector<2x256xf32>
      %c0_14 = arith.constant 0 : index
      %c0_15 = arith.constant 0 : index
      %19 = vector.load %arg7[%c0_14, %c0_15] : memref<2x256xf32, #tpu.memory_space<vmem>>, vector<2x256xf32>
      tpu.vector_store %arg7[%c0_14, %c0_15], %18 {strides = array<i32>} : memref<2x256xf32, #tpu.memory_space<vmem>>, vector<2x256xf32>,
    } else {
    }
    %3 = arith.index_cast %arg2 : i32 to index
    %c0 = arith.constant 0 : index
    %4 = vector.load %arg4[%3, %c0] : memref<1x4xf32, #tpu.memory_space<vmem>>, vector<1x4xf32>
    %c0_1 = arith.constant 0 : index
    %c0_2 = arith.constant 0 : index
    %c0_3 = arith.constant 0 : index
    %5 = vector.load %arg5[%c0_1, %c0_2, %c0_3] : memref<2x4x256xf32, #tpu.memory_space<vmem>>, vector<1x4x256xf32>
    %6 = vector.shape_cast %5 : vector<1x4x256xf32> to vector<4x256xf32>
    %cst = arith.constant dense<0.000000e+00> : vector<1x256xf32>
    %7 = tpu.matmul %4, %6, %cst {dimension_numbers = #tpu.dot_dimension_numbers<[1], [0], [0], [1], [0, 0, 1, 1], [], []>} : vector<1x4xf32>, vector<4x256xf32>, vector<1x256xf32> -> vector<1x256xf32>
    %c1 = arith.constant 1 : index
    %c0_4 = arith.constant 0 : index
    %c0_5 = arith.constant 0 : index
    %8 = vector.load %arg5[%c1, %c0_4, %c0_5] : memref<2x4x256xf32, #tpu.memory_space<vmem>>, vector<1x4x256xf32>
    %9 = vector.shape_cast %8 : vector<1x4x256xf32> to vector<4x256xf32>
    %cst_6 = arith.constant dense<0.000000e+00> : vector<1x256xf32>
    %10 = tpu.matmul %4, %9, %cst_6 {dimension_numbers = #tpu.dot_dimension_numbers<[1], [0], [0], [1], [0, 0, 1, 1], [], []>} : vector<1x4xf32>, vector<4x256xf32>, vector<1x256xf32> -> vector<1x256xf32>
    %11 = tpu.concatenate %7, %10 in 0 : vector<1x256xf32>, vector<1x256xf32> -> vector<2x256xf32>
    %c0_7 = arith.constant 0 : index
    %c0_8 = arith.constant 0 : index
    %12 = vector.load %arg7[%c0_7, %c0_8] : memref<2x256xf32, #tpu.memory_space<vmem>>, vector<2x256xf32>
    %13 = arith.addf %12, %11 : vector<2x256xf32>
    %c0_9 = arith.constant 0 : index
    %c0_10 = arith.constant 0 : index
    %14 = vector.load %arg7[%c0_9, %c0_10] : memref<2x256xf32, #tpu.memory_space<vmem>>, vector<2x256xf32>
    tpu.vector_store %arg7[%c0_9, %c0_10], %13 {strides = array<i32>} : memref<2x256xf32, #tpu.memory_space<vmem>>, vector<2x256xf32>,
    %c0_i32_11 = arith.constant 0 : i32
    %15 = arith.cmpi eq, %arg2, %c0_i32_11 : i32
    %16 = arith.extui %15 : i1 to i32
    %c0_i32_12 = arith.constant 0 : i32
    %17 = arith.cmpi ne, %16, %c0_i32_12 : i32
    scf.if %17 {
      %c0_13 = arith.constant 0 : index
      %c0_14 = arith.constant 0 : index
      %18 = vector.load %arg7[%c0_13, %c0_14] : memref<2x256xf32, #tpu.memory_space<vmem>>, vector<2x256xf32>
      %c0_15 = arith.constant 0 : index
      %19 = memref.load %arg3[%c0_15] : memref<1xf32, #tpu.memory_space<smem>>
      %20 = vector.broadcast %19 : f32 to vector<2x256xf32>
      %21 = arith.addf %18, %20 : vector<2x256xf32>
      %c0_16 = arith.constant 0 : index
      %c0_17 = arith.constant 0 : index
      %22 = vector.load %arg6[%c0_16, %c0_17] : memref<2x256xf32, #tpu.memory_space<vmem>>, vector<2x256xf32>
      tpu.vector_store %arg6[%c0_16, %c0_17], %21 {strides = array<i32>} : memref<2x256xf32, #tpu.memory_space<vmem>>, vector<2x256xf32>,
    } else {
    }
    return
  }
  func.func @transform_0(%arg0: i32, %arg1: i32, %arg2: i32) -> i32 {
    %c0_i32 = arith.constant 0 : i32
    %c0_i32_0 = arith.constant 0 : i32
    return %c0_i32 : i32
  }
  func.func @transform_1(%arg0: i32, %arg1: i32, %arg2: i32) -> (i32, i32) {
    %c0_i32 = arith.constant 0 : i32
    %c0_i32_0 = arith.constant 0 : i32
    %c0_i32_1 = arith.constant 0 : i32
    return %c0_i32, %c0_i32_0 : i32, i32
  }
  func.func @transform_2(%arg0: i32, %arg1: i32, %arg2: i32) -> (i32, i32, i32) {
    %c0_i32 = arith.constant 0 : i32
    return %arg0, %arg2, %arg1 : i32, i32, i32
  }
  func.func @transform_3(%arg0: i32, %arg1: i32, %arg2: i32) -> (i32, i32) {
    %c0_i32 = arith.constant 0 : i32
    return %arg0, %arg1 : i32, i32
  }
}

</mosaic_0001>

<bundles_post_ra>
// kernel: tpu_custom_call.1
= control target key start
LH: loop header
LB: loop body
LE: loop exit
PB: predicated region body
PF: predicated region fallthrough
CT: control target
= control target key end

     0   :  { %9 = vsyncpa [#allocation5], 0  ;;  %s362_s0 = inlined_call_operand.<no memory space> [shape: f32[1], index: 0, kind: input, shape index: {}]   ;;  %s363_s1 = inlined_call_operand.vmem [shape: f32[1,4], index: 1, kind: input, shape index: {}]   ;;  %s364_s2 = inlined_call_operand.hbm [shape: f32[2,4,256], index: 2, kind: input, shape index: {}]   ;;  %s365_s3 = inlined_call_operand.hbm [shape: f32[2,256], index: 3, kind: output, shape index: {}]  }
   0x1   :  { %10 = vsyncpa [#allocation6], 0  ;;  %s306_s12 = smov [#allocation4]   ;;  %s258_s16 = scalar_lea.hbm %s364_s2, 256 }
   0x2   :  { %s20_s13 = sshll.u32 %s306_s12, 4  ;;  %p259_p0 = scmp.ne.s32.totalorder %s364_s2, %s258_s16  ;;  %s21_s13 = int_to_ptr.vmem [resolvable:$true] %s20_s13 }
   0x3   :  { %p262_p1 = scmp.lt.u32.totalorder %s258_s16, %s364_s2 }
   0x5   :  { %p264_p2 = pnand %p262_p1, %p259_p0 }
   0x7   :  { %267 = shalt.err (!%p264_p2)
}
   0x8   :  { %s268_s21 = scalar_lea.vmem %s21_s13, 256  ;;  %p273_p4 = scmp.lt.s32.totalorder %s21_s13, %s21_s13 }
   0x9   :  { %p269_p3 = scmp.ne.s32.totalorder %s21_s13, %s268_s21  ;;  %p274_p5 = scmp.lt.s32.totalorder %s268_s21, %s268_s21 }
   0xb   :  { %p275_p6 = por %p274_p5, %p273_p4 }
   0xd   :  { %p276_p7 = pnand %p275_p6, %p269_p3 }
   0xf   :  { %279 = shalt.err (!%p276_p7)
}
  0x10   :  { %s307_s22 = smov 128   ;;  %s308_s23 = smov 8  }
  0x11   :  { %26 = dma.hbm_to_vmem [thread:$0]  %s364_s2, 256, %s21_s13, [#allocation5], %s307_s22, %s307_s22, %s308_s23  }
  0x12   :  { %302 = dma.done.wait [#allocation5], 256  }
  0x13   :  { %303 = vsyncadd [#allocation5], 4294967040  ;;  %v309_v0 = vmov 0.0   ;;  %vm43_vm0 = vcmask 1043456   ;;  %v120_v1 = vld [vmem:[#allocation4 + $0x8] sm:$0xff]  ;;  %v36_v2 = vld [vmem:[#allocation4] sm:$0xff]  ;;  %v214_v8 = vlaneseq  ;;  %v226_v24 = vstv %s362_s0 }
  0x14   :  { %34 = vst [vmem:[#allocation2] sm:$0xf] %v309_v0  ;;  %191 = vmatprep.mubr.f32.mxu1 %v309_v0  ;;  %112 = vmatprep.mubr.f32.mxu0 %v309_v0  ;;  %v122_v3 = vcombine.high %v120_v1, %v120_v1  ;;  %v38_v4 = vcombine.high %v36_v2, %v36_v2  ;;  %v35_v5 = vld [vmem:[%s363_s1] sm:$0x1]  ;;  %vm39_vm1 = vcmask 31744   ;;  %vm204_vm2 = vcmask 1040384  }
  0x15   :  { %v310_v6 = vmov 1983009808   ;;  %v215_v10 = vshrl.u32 %v214_v8, 7  ;;  %s311_s28 = smov [#allocation7]  }
  0x16   :  { %247 = vmatprep.subr.msk.mxu1 %vm43_vm0, %v122_v3  ;;  %244 = vmatprep.subr.msk.mxu0 %vm43_vm0, %v38_v4  ;;  %v212_v7 = vunpack.c.l.s4 %v310_v6  ;;  %s235_s29 = sshll.u32 %s311_s28, 4  ;;  %s236_s29 = int_to_ptr.vmem [resolvable:$true] %s235_s29 }
  0x17   :  { %248 = vmatpush1.msk.msra.mxu1 %vm43_vm0, %v120_v1  ;;  %245 = vmatpush1.msk.msra.mxu0 %vm43_vm0, %v36_v2  ;;  %s280_s30 = scalar_lea.vmem %s236_s29, 64  ;;  %p285_p9 = scmp.lt.s32.totalorder %s236_s29, %s236_s29 }
  0x18   :  { %249 = vmatmul.mubr.msk.f32.vlgmr.msra.gmra.mrb[0].mxu1 %vm39_vm1, %v35_v5  ;;  %246 = vmatmul.mubr.msk.f32.vlgmr.msra.gmra.mrb[0].mxu0 %vm39_vm1, %v35_v5  ;;  %v213_v9 = vunpack.c.0.s8 %v212_v7  ;;  %p281_p8 = scmp.ne.s32.totalorder %s236_s29, %s280_s30  ;;  %p286_p10 = scmp.lt.s32.totalorder %s280_s30, %s280_s30 }
  0x1a   :  { %v216_v18 = vsub.s32 %v213_v9, %v215_v10  ;;  %p287_p11 = por %p286_p10, %p285_p9 }
  0x1b   :  { %v207_v21 = vld [vmem:[#allocation2] sm:$0xf] }
  0x1c   :  { %p288_p12 = pnand %p287_p11, %p281_p8 }
  0xeb   :  { %v193_v11 = vpop.f32.mrb[0].mxu1  ;;  %v114_v12 = vpop.f32.mrb[0].mxu0 }
  0xec   :  { %v200_v13 = vrot.slane %v193_v11, 7  ;;  %v195_v14 = vpop.f32.mrb[1].mxu1  ;;  %v116_v15 = vpop.f32.mrb[1].mxu0 }
  0xed   :  { %v201_v16 = vrot.slane %v195_v14, 7 }
  0xee   :  { %v205_v17 = vsel %vm204_vm2, %v114_v12, %v200_v13 }
  0xef   :  { %v206_v19 = vsel %vm204_vm2, %v116_v15, %v201_v16 }
  0xf0   :  { %v210_v20 = vcombine.low %v205_v17, %v206_v19 }
  0xf2   :  { %v217_v22 = vrot.slane %v210_v20, %v216_v18 }
  0xf4   :  { %v219_v23 = vadd.f32 %v217_v22, %v207_v21 }
  0xf6   :  { %220 = vst [vmem:[#allocation2] sm:$0xf] %v219_v23 }
  0xfd   :  { %v224_v25 = vld [vmem:[#allocation2] sm:$0xf] }
  0xfe   :  { %v227_v26 = vadd.f32 %v226_v24, %v224_v25 }
 0x100   :  { %228 = vst [vmem:[#allocation7] sm:$0xf] %v227_v26 }
 0x101   :  { %291 = shalt.err (!%p288_p12)
}
 0x102   :  { %s292_s6 = scalar_lea.hbm %s365_s3, 64 }
 0x103   :  { %p293_p13 = scmp.ne.s32.totalorder %s365_s3, %s292_s6  ;;  %p296_p0 = scmp.lt.u32.totalorder %s292_s6, %s365_s3 }
 0x105   :  { %p298_p1 = pnand %p296_p0, %p293_p13 }
 0x107   :  { %301 = shalt.err (!%p298_p1)
}
 0x108   :  { %238 = dma.vmem_to_hbm [thread:$0]  %s236_s29, 64, %s365_s3, [#allocation6]  }
 0x109   :  { %304 = dma.done.wait [#allocation6], 64  }
 0x10a   :  { %305 = vsyncadd [#allocation6], 4294967232 }
 0x10b   :  { %242 = vsyncpa [#allocation5], 1 }
 0x10c   :  { %243 = vsyncpa [#allocation6], 1 }

</bundles_post_ra>
